<compile_context>
chip_gen: v6e
topology: v6e:2x2x1
jax: 0.10.0
libtpu: 0.0.40
codegen_flags: <defaults>
</compile_context>

<pallas_src>
import functools
import math

import jax
import jax.numpy as jnp
from jax.experimental import pallas as pl
from jax.experimental.pallas import tpu as pltpu


# ----------------------------- tiling helper --------------------------------
def _pick_tile(n, max_tg=4096):
    """Lane-tile width: single tile for small grids, else a 128-multiple divisor."""
    if n <= max_tg:
        return n                       # whole problem in one grid step
    tg = max_tg - max_tg % 128
    while tg >= 128 and n % tg:
        tg -= 128
    return tg if tg >= 128 else n


# ----------------------------- in-kernel math --------------------------------
def _atan_poly(x, recip):
    # arctan via 3x half-angle reduction + 9th-order odd Taylor series.
    # |error| < ~1e-7 with exact recip; approx recip adds ~1e-4 (well in tolerance).
    for _ in range(3):
        x = x * recip(1.0 + jnp.sqrt(1.0 + x * x))
    x2 = x * x
    p = x * (1.0 + x2 * (-1.0 / 3.0 + x2 * (1.0 / 5.0
                                            + x2 * (-1.0 / 7.0 + x2 * (1.0 / 9.0)))))
    return 8.0 * p


def _exc_vwn(n, atan, recip):
    # VWN LDA exchange-correlation energy density (standard DFT++ constants).
    X1 = 0.75 * (3.0 / (2.0 * math.pi)) ** (2.0 / 3.0)
    A = 0.0310907
    x0 = -0.10498
    b = 3.72744
    c = 12.9352
    Q = math.sqrt(4.0 * c - b * b)
    X0 = x0 * x0 + b * x0 + c
    rs = jnp.exp((-1.0 / 3.0) * jnp.log((4.0 * math.pi / 3.0) * n))
    x = jnp.sqrt(rs)
    X = x * x + b * x + c
    at = atan(Q * recip(2.0 * x + b))
    return (-X1 * recip(rs)
            + A * (jnp.log(x * x * recip(X)) + 2.0 * b / Q * at
                   - (b * x0) / X0 * (jnp.log((x - x0) * (x - x0) * recip(X))
                                      + 2.0 * (2.0 * x0 + b) / Q * at)))


# ------------------------------ Pallas kernels -------------------------------
def gram_kernel(p_ref, g_ref):
    """Per-tile partial of P @ P^T, P = [Re(W^T); Im(W^T)], contraction over lanes."""
    p = p_ref[...]                                   # (2L, TG)
    g_ref[...] = jax.lax.dot_general(
        p, p, (((1,), (1,)), ((), ())), preferred_element_type=jnp.float32)


def density_ke_exc_kernel(wt_ref, iwt_ref, lm_ref, m2_ref, m2j_ref,
                          nr_ref, ni_ref, exc_ref, ker_ref, kei_ref, *, f):
    """Fused density n, VWN exc(n), and per-grid-point KE partials.

    Complex matmuls use the 2Lx2L real embedding M2 of invn^T (one MXU dot per
    complex product) and M2J = J @ M2 (J = [[0,-I],[I,0]]) so imaginary parts
    come out without slicing the packed (2L, TG) operands.
    """
    dot = lambda a, b: jnp.dot(a, b, preferred_element_type=jnp.float32)
    m2 = m2_ref[...]
    m2j = m2j_ref[...]

    # density: n_g = f * sum_l conj(IW @ invn)_{g,l} * IW_{g,l}   (lane = grid point)
    iwt = iwt_ref[...]                               # (2L, TG) = [Re(IW^T); Im(IW^T)]
    y1 = dot(m2, iwt)                                # [Re(Y1^T); Im(Y1^T)]
    y1j = dot(m2j, iwt)                              # [-Im(Y1^T); Re(Y1^T)]
    nr = f * jnp.sum(y1 * iwt, axis=0, keepdims=True)     # (1, TG)
    ni = f * jnp.sum(y1j * iwt, axis=0, keepdims=True)
    nr_ref[...] = nr
    ni_ref[...] = ni

    # fused excVWN on the (clamped) real density — transcendentals ride the EUP slot.
    recip = lambda v: pl.reciprocal(v, approx=True)
    exc_ref[...] = _exc_vwn(jnp.maximum(nr, 1e-30),
                            atan=lambda v: _atan_poly(v, recip), recip=recip)

    # KE partials: Lm_g * sum_l conj(W)_{g,l} (W @ invn)_{g,l}  per grid point.
    wt = wt_ref[...]
    y2 = dot(m2, wt)
    y2j = dot(m2j, wt)
    lm = lm_ref[...]                                 # (1, TG)
    ker_ref[...] = lm * jnp.sum(y2 * wt, axis=0, keepdims=True)
    kei_ref[...] = -lm * jnp.sum(y2j * wt, axis=0, keepdims=True)


def pe_kernel(s_ref, per_ref, pei_ref):
    """Per-grid-point partials of PE = sum(Veff*n) + sum(conj(n)*cJdag(O(phi))).

    s_ref rows: [Re Veff, Im Veff, Re n, Im n, Re Vphi, Im Vphi, 0, 0].
    """
    s = s_ref[...]                                   # (8, TG) single packed stream
    vr, vi = s[0:1, :], s[1:2, :]
    nr, ni = s[2:3, :], s[3:4, :]
    qr, qi = s[4:5, :], s[5:6, :]
    per_ref[...] = vr * nr - vi * ni + nr * qr + ni * qi
    pei_ref[...] = vr * ni + vi * nr + nr * qi - ni * qr


# ------------------------------ kernel wrappers ------------------------------
def gram_pallas(pw, tg):
    two_l, n = pw.shape
    g = n // tg
    out = pl.pallas_call(
        gram_kernel,
        out_shape=jax.ShapeDtypeStruct((g * two_l, two_l), jnp.float32),
        grid_spec=pltpu.PrefetchScalarGridSpec(
            num_scalar_prefetch=0, grid=(g,),
            in_specs=[pl.BlockSpec((two_l, tg), lambda i: (0, i))],
            out_specs=pl.BlockSpec((two_l, two_l), lambda i: (i, 0))),
        compiler_params=pltpu.CompilerParams(dimension_semantics=("parallel",)),
    )(pw)
    # per-tile partials summed in f32 on the host side of the call.
    return jnp.sum(out.reshape(g, two_l, two_l), axis=0)


def density_ke_exc_pallas(wt, iwt, lm, m2, m2j, f, tg):
    two_l, n = wt.shape
    g = n // tg
    kern = functools.partial(density_ke_exc_kernel, f=float(f))
    row = lambda: pl.BlockSpec((1, tg), lambda i: (0, i))
    full = lambda: pl.BlockSpec((two_l, two_l), lambda i: (0, 0))
    return pl.pallas_call(
        kern,
        out_shape=tuple(jax.ShapeDtypeStruct((1, n), jnp.float32) for _ in range(5)),
        grid_spec=pltpu.PrefetchScalarGridSpec(
            num_scalar_prefetch=0, grid=(g,),
            in_specs=[pl.BlockSpec((two_l, tg), lambda i: (0, i)),
                      pl.BlockSpec((two_l, tg), lambda i: (0, i)),
                      row(), full(), full()],
            out_specs=(row(), row(), row(), row(), row())),
        compiler_params=pltpu.CompilerParams(dimension_semantics=("parallel",)),
    )(wt, iwt, lm, m2, m2j)


def pe_pallas(s8, tg):
    rows, n = s8.shape
    g = n // tg
    row = lambda: pl.BlockSpec((1, tg), lambda i: (0, i))
    per, pei = pl.pallas_call(
        pe_kernel,
        out_shape=(jax.ShapeDtypeStruct((1, n), jnp.float32),
                   jax.ShapeDtypeStruct((1, n), jnp.float32)),
        grid_spec=pltpu.PrefetchScalarGridSpec(
            num_scalar_prefetch=0, grid=(g,),
            in_specs=[pl.BlockSpec((rows, tg), lambda i: (0, i))],
            out_specs=(row(), row())),
        compiler_params=pltpu.CompilerParams(dimension_semantics=("parallel",)),
    )(s8)
    return jnp.sum(per) + 1j * jnp.sum(pei)


# ------------------------- plain-JAX glue (setup / FFT) ----------------------
def _c2r(M):
    Mr, Mi = jnp.real(M), jnp.imag(M)
    return jnp.block([[Mr, -Mi], [Mi, Mr]])


def _r2c(R, L):
    return R[:L, :L] + 1j * R[L:, :L]


def cinv(M):
    """Complex matrix inverse via the real 2Lx2L embedding (TPU-safe)."""
    L = M.shape[0]
    return _r2c(jnp.linalg.inv(_c2r(M)), L)


def cinvsqrt_hermitian(M):
    """M^{-1/2} for Hermitian PSD M (== U diag(S^-0.5) Vh from torch.linalg.svd)."""
    L = M.shape[0]
    R = _c2r(M)
    w, V = jnp.linalg.eigh(R)
    return _r2c((V * (w ** -0.5)) @ V.T, L)


def make_cell(sample, a):
    N = sample ** 3
    detR = a ** 3
    idx = jnp.arange(sample)
    freq = jnp.where(idx > sample // 2, idx - sample, idx).astype(jnp.float32)
    fx, fy, fz = jnp.meshgrid(freq, freq, freq, indexing="ij")
    Gx = (2.0 * math.pi / a) * fx
    Gy = (2.0 * math.pi / a) * fy
    Gz = (2.0 * math.pi / a) * fz
    G2 = Gx * Gx + Gy * Gy + Gz * Gz
    return dict(sample=sample, N=N, a=a, detR=detR, Gx=Gx, Gy=Gy, Gz=Gz, G2=G2)


def orthogonalise(W, detR):
    shp = W.shape
    L = shp[-1]
    Wm = W.reshape(-1, L)
    norm = detR * jnp.einsum("nl,nm->lm", Wm.conj(), Wm,
                             precision=jax.lax.Precision.HIGHEST)
    return (Wm @ cinvsqrt_hermitian(norm)).reshape(shp)


# ------------------------------- forward pass --------------------------------
def dft_forward(W, x_real, y_real, cell, f, use_pallas=True):
    s = cell["sample"]; N = cell["N"]; detR = cell["detR"]
    G2 = cell["G2"]; Gx, Gy, Gz = cell["Gx"], cell["Gy"], cell["Gz"]
    L = W.shape[-1]
    Wm = W.reshape(N, L)
    tg = _pick_tile(N)
    Lm_row = (-detR * G2).reshape(1, N).astype(jnp.float32)   # cell.Lm, lane-major

    # norm = einsum('ijkl,ijkm', conj(W), O(W)) with O(W) = detR * W
    if use_pallas:
        Wt = jnp.concatenate([jnp.real(Wm).T, jnp.imag(Wm).T],
                             axis=0).astype(jnp.float32)        # (2L, N) packed
        Gp = gram_pallas(Wt, tg)
        gr = Gp[:L, :L] + Gp[L:, L:]
        gi = Gp[:L, L:] - Gp[L:, :L]
        norm = detR * (gr + 1j * gi)
    else:
        norm = detR * jnp.einsum("nl,nm->lm", Wm.conj(), Wm,
                                 precision=jax.lax.Precision.HIGHEST)
    norm = 0.5 * (norm + norm.conj().T)              # Hermitian insurance
    invn = cinv(norm)

    # IW = cell.cI(W)  -- 3-D FFT kept in plain JAX glue.
    # TODO(synk): no clean Pallas equivalent for the 3-D FFTs (cell.cI/cJ/cJdag).
    IWm = (jnp.fft.ifftn(W, axes=(0, 1, 2)) * N).reshape(N, L)

    if use_pallas:
        IWt = jnp.concatenate([jnp.real(IWm).T, jnp.imag(IWm).T],
                              axis=0).astype(jnp.float32)       # (2L, N) packed
        A = invn.T                                   # Y^T = invn^T @ W^T
        Ar = jnp.real(A).astype(jnp.float32)
        Ai = jnp.imag(A).astype(jnp.float32)
        M2 = jnp.block([[Ar, -Ai], [Ai, Ar]])        # real embedding of invn^T
        M2J = jnp.block([[-Ai, -Ar], [Ar, -Ai]])     # J @ M2 (imag-part trick)
        nr, ni, exc_row, ker, kei = density_ke_exc_pallas(Wt, IWt, Lm_row,
                                                          M2, M2J, f, tg)
        n = (nr + 1j * ni)[0]
        exc = exc_row[0]
        ke_sum = jnp.sum(ker) + 1j * jnp.sum(kei)
    else:
        Y1 = IWm @ invn
        n = f * jnp.sum(Y1.conj() * IWm, axis=-1)
        Y2 = Wm @ invn
        ke_sum = jnp.sum(Wm.conj() * Lm_row.reshape(N, 1) * Y2)
        # TODO(synk): torch applies excVWN to the complex density; imag(n) == 0
        # analytically, so exc is evaluated on the (clamped) real density.
        exc = _exc_vwn(jnp.maximum(jnp.real(n), 1e-30),
                       atan=jnp.arctan, recip=lambda v: 1.0 / v)
    KE = -0.5 * f * ke_sum

    # Veff = getVdual(): synthetic IonicPotential (Z = 1 Coulomb pseudopotential).
    # TODO(synk): original IonicPotential class not provided; DFT++-style stand-in.
    Z = 1.0
    ions = jnp.array([[-x_real, y_real, 0.0],
                      [0.0, 0.0, 0.0],
                      [x_real, y_real, 0.0]], dtype=jnp.float32)
    phase = (Gx[..., None] * ions[:, 0] + Gy[..., None] * ions[:, 1]
             + Gz[..., None] * ions[:, 2])
    Sf = jnp.sum(jnp.exp(-1j * phase), axis=-1)                 # structure factor
    G2safe = jnp.where(G2 > 0, G2, 1.0)
    VpsG = jnp.where(G2 > 0, -4.0 * math.pi * Z / G2safe, 0.0)
    Veff = jnp.fft.ifftn(VpsG * Sf).reshape(N)                  # cJdag(Vps * Sf)

    # phi = 0.5 * reciprocal_poisson_solve(n) + cJ(excVWN(n))  (reciprocal space)
    cJn = jnp.fft.fftn(n.reshape(s, s, s)) / N
    phi_h = jnp.where(G2 > 0, 4.0 * math.pi * cJn / G2safe, 0.0)
    cJexc = jnp.fft.fftn(exc.reshape(s, s, s)) / N
    phi = 0.5 * phi_h + cJexc
    Vphi = jnp.fft.ifftn(detR * phi).reshape(N)                 # cJdag(O(phi))

    # PE = sum(Veff * n) + sum(conj(n) * cJdag(O(phi)))
    if use_pallas:
        S6 = jnp.stack([jnp.real(Veff), jnp.imag(Veff),
                        jnp.real(n), jnp.imag(n),
                        jnp.real(Vphi), jnp.imag(Vphi)], axis=0).astype(jnp.float32)
        S8 = jnp.concatenate([S6, jnp.zeros((2, N), jnp.float32)], axis=0)
        PE = pe_pallas(S8, tg)
    else:
        PE = jnp.sum(Veff * n) + jnp.sum(n.conj() * Vphi)

    # potential.ewald(): Gaussian-compensated reciprocal-space Ewald (small glue).
    sigma1 = 0.25
    ngG = (Z / detR) * jnp.exp(-0.5 * G2 * sigma1 ** 2) * Sf
    phig = jnp.where(G2 > 0, 4.0 * math.pi * ngG / G2safe, 0.0)
    Eewald = (0.5 * jnp.real(jnp.sum(jnp.conj(ngG) * (detR * phig)))
              - ions.shape[0] * Z * Z / (2.0 * math.sqrt(math.pi) * sigma1))

    return jnp.real(KE + PE + Eewald)


# ------------------------------------ main ------------------------------------
if __name__ == "__main__":
    sample, norbitals, a, f = 8, 4, 6.0, 2.0       # S^3 = 512 grid points, 4 orbitals
    cell = make_cell(sample, a)

    key = jax.random.PRNGKey(0)
    kr, ki = jax.random.split(key)
    shape = (sample, sample, sample, norbitals)
    W0 = (jax.random.uniform(kr, shape, dtype=jnp.float32)
          + 1j * jax.random.uniform(ki, shape, dtype=jnp.float32)).astype(jnp.complex64)
    W = orthogonalise(W0, cell["detR"])            # initW()
    x_real, y_real = 1.5, 1.5                      # real parts of self.x, self.y

    e_pallas = jax.block_until_ready(
        dft_forward(W, x_real, y_real, cell, f, use_pallas=True))
    e_ref = jax.block_until_ready(
        dft_forward(W, x_real, y_real, cell, f, use_pallas=False))

    assert bool(jnp.isfinite(e_pallas)), e_pallas
    assert bool(jnp.allclose(e_pallas, e_ref, rtol=1e-2, atol=1e-2)), (e_pallas, e_ref)
    print("KERNEL_OK")
</pallas_src>

<mosaic_0001>
module attributes {stable_mosaic.version = 11 : i64} {
  func.func @gram_kernel(%arg0: i32, %arg1: memref<8x512xf32, #tpu.memory_space<vmem>>, %arg2: memref<8x8xf32, #tpu.memory_space<vmem>>) attributes {dimension_semantics = [#tpu.dimension_semantics<parallel>], iteration_bounds = array<i64: 1>, scalar_prefetch = 0 : i64, scratch_operands = 0 : i64, tpu.core_type = #tpu.core_type<tc>, window_params = [{transform_indices = @transform_0, window_bounds = array<i64: 8, 512>}, {transform_indices = @transform_1, window_bounds = array<i64: 8, 8>}]} {
    %c0 = arith.constant 0 : index
    %c0_0 = arith.constant 0 : index
    %0 = vector.load %arg1[%c0, %c0_0] : memref<8x512xf32, #tpu.memory_space<vmem>>, vector<8x512xf32>
    %cst = arith.constant dense<0.000000e+00> : vector<8x8xf32>
    %1 = tpu.matmul %0, %0, %cst {dimension_numbers = #tpu.dot_dimension_numbers<[1], [1], [0], [0], [0, 0, 1, 0], [], []>} : vector<8x512xf32>, vector<8x512xf32>, vector<8x8xf32> -> vector<8x8xf32>
    %c0_1 = arith.constant 0 : index
    %c0_2 = arith.constant 0 : index
    %2 = vector.load %arg2[%c0_1, %c0_2] : memref<8x8xf32, #tpu.memory_space<vmem>>, vector<8x8xf32>
    tpu.vector_store %arg2[%c0_1, %c0_2], %1 {strides = array<i32>} : memref<8x8xf32, #tpu.memory_space<vmem>>, vector<8x8xf32>,
    return
  }
  func.func @transform_0(%arg0: i32) -> (i32, i32) {
    %c0_i32 = arith.constant 0 : i32
    %c0_i32_0 = arith.constant 0 : i32
    return %c0_i32, %arg0 : i32, i32
  }
  func.func @transform_1(%arg0: i32) -> (i32, i32) {
    %c0_i32 = arith.constant 0 : i32
    %c0_i32_0 = arith.constant 0 : i32
    return %arg0, %c0_i32 : i32, i32
  }
}

</mosaic_0001>

<bundles_post_ra>
// kernel: tpu_custom_call.1
= control target key start
LH: loop header
LB: loop body
LE: loop exit
PB: predicated region body
PF: predicated region fallthrough
CT: control target
= control target key end

     0   :  { %6 = vsyncpa [#allocation3], 0  ;;  %s246_s0 = inlined_call_operand.hbm [shape: f32[8,512], index: 0, kind: input, shape index: {}]   ;;  %s247_s1 = inlined_call_operand.hbm [shape: f32[8,8], index: 1, kind: output, shape index: {}]  }
   0x1   :  { %7 = vsyncpa [#allocation4], 0  ;;  %s228_s6 = smov [#allocation2]  }
   0x2   :  { %s14_s7 = sshll.u32 %s228_s6, 4  ;;  %s15_s7 = int_to_ptr.vmem [resolvable:$true] %s14_s7 }
   0x3   :  { %s192_s8 = scalar_lea.vmem %s15_s7, 512  ;;  %p197_p1 = scmp.lt.s32.totalorder %s15_s7, %s15_s7 }
   0x4   :  { %p193_p0 = scmp.ne.s32.totalorder %s15_s7, %s192_s8  ;;  %p198_p2 = scmp.lt.s32.totalorder %s192_s8, %s192_s8 }
   0x6   :  { %p199_p3 = por %p198_p2, %p197_p1 }
   0x8   :  { %p200_p4 = pnand %p199_p3, %p193_p0 }
   0xa   :  { %203 = shalt.err (!%p200_p4)
}
   0xb   :  { %17 = dma.hbm_to_vmem [thread:$0]  %s246_s0, 512, %s15_s7, [#allocation3]  }
   0xc   :  { %224 = dma.done.wait [#allocation3], 512  }
   0xd   :  { %225 = vsyncadd [#allocation3], 4294966784  ;;  %v22_v0 = vld [vmem:[#allocation2 + $0x8] sm:$0xff]  ;;  %v24_v1 = vld [vmem:[#allocation2 + $0x18] sm:$0xff]  ;;  %s229_s11 = smov [#allocation5]   ;;  %vm165_vm0 = vcmask 64512  }
   0xe   :  { %v21_v2 = vld [vmem:[#allocation2] sm:$0xff]  ;;  %55 = vmatprep.subr.mxu0 %v22_v0  ;;  %125 = vmatprep.subr.mxu1 %v24_v1  ;;  %v23_v3 = vld [vmem:[#allocation2 + $0x10] sm:$0xff]  ;;  %s173_s12 = sshll.u32 %s229_s11, 4  ;;  %s174_s12 = int_to_ptr.vmem [resolvable:$true] %s173_s12 }
   0xf   :  { %56 = vmatpush1.xpose.msra.mxu0 %v21_v2  ;;  %126 = vmatpush1.xpose.msra.mxu1 %v23_v3  ;;  %s204_s0 = scalar_lea.vmem %s174_s12, 128  ;;  %p209_p6 = scmp.lt.s32.totalorder %s174_s12, %s174_s12 }
  0x10   :  { %89 = vmatprep.mubr.f32.mxu0 %v22_v0  ;;  %159 = vmatprep.mubr.f32.mxu1 %v24_v1  ;;  %p205_p5 = scmp.ne.s32.totalorder %s174_s12, %s204_s0  ;;  %p210_p7 = scmp.lt.s32.totalorder %s204_s0, %s204_s0 }
  0x12   :  { %90 = vmatmul.mubr.f32.vlgmr.msra.gmra.mxu0 %v21_v2  ;;  %160 = vmatmul.mubr.f32.vlgmr.msra.gmra.mxu1 %v23_v3  ;;  %p211_p8 = por %p210_p7, %p209_p6 }
  0x14   :  { %p212_p9 = pnand %p211_p8, %p205_p5 }
  0xd2   :  { %v91_v4 = vpop.f32.mrf.mxu0  ;;  %v161_v5 = vpop.f32.mrf.mxu1 }
  0xd3   :  { %v162_v6 = vadd.f32 %v161_v5, %v91_v4 }
  0xd4   :  { %v93_v7 = vpop.f32.mrf.mxu0  ;;  %v163_v8 = vpop.f32.mrf.mxu1 }
  0xd5   :  { %166 = vst.msk [vmem:[#allocation5] sm:$0xff] %vm165_vm0, %v162_v6 }
  0xd6   :  { %215 = shalt.err (!%p212_p9)
}
  0xd7   :  { %176 = dma.vmem_to_hbm [thread:$0]  %s174_s12, 128, %s247_s1, [#allocation4]  }
  0xd8   :  { %226 = dma.done.wait [#allocation4], 128  }
  0xd9   :  { %227 = vsyncadd [#allocation4], 4294967168 }
  0xda   :  { %180 = vsyncpa [#allocation3], 1 }
  0xdb   :  { %181 = vsyncpa [#allocation4], 1 }

</bundles_post_ra>
